<compile_context>
chip_gen: v5e
topology: v5e:2x2
jax: 0.10.0
libtpu: 0.0.40
codegen_flags: <defaults>
</compile_context>

<pallas_src>
import jax
import jax.numpy as jnp
from jax.experimental import pallas as pl
from jax.experimental.pallas import tpu as pltpu

PAD = 0  # stand-in for mapping.PAD in the original module


def imdb_kernel(ids_ref, m_ref, bias_ref, out_ref):
    # ids_ref : SMEM (B*L,) int32  -- token ids, scalar-read only
    # m_ref   : VMEM (L*V, C) f32  -- folded contribution table (cached)
    # bias_ref: VMEM (1, C)   f32
    # out_ref : VMEM (B, C)   f32
    B, C = out_ref.shape
    LV = m_ref.shape[0]
    L = ids_ref.shape[0] // B
    V = LV // L

    # Gather-and-accumulate: logits[b] = bias + sum_l M[l*V + ids[b, l], :].
    # B and L are small static ints -> fully unrolled; each step is one
    # scalar SMEM read + scalar add driving a dynamic sublane-row load.
    rows = []
    for b in range(B):
        acc = bias_ref[...]                                  # (1, C)
        for l in range(L):
            idx = ids_ref[b * L + l] + l * V                 # scalar index
            acc = acc + m_ref[pl.ds(idx, 1), :]              # (1, C) gather+add
        rows.append(acc)
    logits = jnp.concatenate(rows, axis=0)                   # (B, C)

    # log_softmax over the last dim (stable, max-shifted logsumexp).
    mx = jnp.max(logits, axis=-1, keepdims=True)
    shifted = logits - mx
    lse = jnp.log(jnp.sum(jnp.exp(shifted), axis=-1, keepdims=True))
    out_ref[...] = shifted - lse


def prepare_params(emb_table, fc_weight, fc_bias):
    """One-time fold at weight-load time. Do NOT call per forward step.

    Returns:
      M    : (L*V, C) f32 with M[l*V + v, c] = emb[v] @ W[c, l*E:(l+1)*E]
      bias : (1, C)   f32
    """
    V, E = emb_table.shape
    C, LE = fc_weight.shape
    L = LE // E
    emb = jnp.asarray(emb_table, jnp.float32)                 # (V, E)
    W3 = jnp.asarray(fc_weight, jnp.float32).reshape(C, L, E)  # (C, L, E)
    M = jnp.einsum('ve,cle->lvc', emb, W3,
                   precision=jax.lax.Precision.HIGHEST).reshape(L * V, C)
    bias = jnp.asarray(fc_bias, jnp.float32).reshape(1, C)
    return M, bias


def imdb_forward(ids, M, bias):
    """ids: (B, L) int; M: (L*V, C) f32 from prepare_params; bias: (1, C)."""
    B, L = ids.shape
    C = M.shape[1]
    flat_ids = ids.reshape(B * L).astype(jnp.int32)
    return pl.pallas_call(
        imdb_kernel,
        out_shape=jax.ShapeDtypeStruct((B, C), jnp.float32),
        in_specs=[
            pl.BlockSpec(memory_space=pltpu.MemorySpace.SMEM),  # ids  (B*L,)
            pl.BlockSpec(memory_space=pltpu.MemorySpace.VMEM),  # M    (L*V, C)
            pl.BlockSpec(memory_space=pltpu.MemorySpace.VMEM),  # bias (1, C)
        ],
        out_specs=pl.BlockSpec(memory_space=pltpu.MemorySpace.VMEM),
    )(flat_ids, M, bias)


def imdb_reference(ids, emb_table, fc_weight, fc_bias):
    embed = emb_table[ids]                                    # (B, L, E)
    flat = embed.reshape(ids.shape[0], -1)                    # (B, L*E)
    out = jnp.dot(flat, fc_weight.T,
                  precision=jax.lax.Precision.HIGHEST) + fc_bias
    return jax.nn.log_softmax(out, axis=-1)


if __name__ == "__main__":
    # Small, deterministic problem sizes consistent with the module.
    vocab_size = 32
    max_len = 8
    embedding_size = 50
    batch = 4
    num_classes = 2

    key = jax.random.PRNGKey(0)
    k_emb, k_w, k_b, k_ids = jax.random.split(key, 4)

    # Embedding table; padding_idx row zeroed (as nn.Embedding does at init).
    emb_table = jax.random.normal(k_emb, (vocab_size, embedding_size),
                                  jnp.float32)
    emb_table = emb_table.at[PAD].set(0.0)

    # Linear(max_len*embedding_size, 2) params, torch-like uniform init bound.
    fan_in = max_len * embedding_size
    bound = 1.0 / (fan_in ** 0.5)
    fc_weight = jax.random.uniform(k_w, (num_classes, fan_in), jnp.float32,
                                   -bound, bound)
    fc_bias = jax.random.uniform(k_b, (num_classes,), jnp.float32,
                                 -bound, bound)

    # Token ids (include some PAD tokens).
    ids = jax.random.randint(k_ids, (batch, max_len), 0, vocab_size,
                             dtype=jnp.int32)
    ids = ids.at[0, -2:].set(PAD)

    # Fold once at weight-load time (hoisted out of the per-call path).
    M, bias = prepare_params(emb_table, fc_weight, fc_bias)

    fwd = jax.jit(imdb_forward)
    out = jax.block_until_ready(fwd(ids, M, bias))

    ref = imdb_reference(ids, emb_table, fc_weight, fc_bias)
    assert out.shape == (batch, num_classes)
    assert jnp.allclose(out, ref, atol=1e-5, rtol=1e-5), (out, ref)

    print("KERNEL_OK")
</pallas_src>

<mosaic_0001>
module attributes {stable_mosaic.version = 11 : i64} {
  func.func @imdb_kernel(%arg0: memref<32xi32, #tpu.memory_space<smem>>, %arg1: memref<256x2xf32, #tpu.memory_space<vmem>>, %arg2: memref<1x2xf32, #tpu.memory_space<vmem>>, %arg3: memref<4x2xf32, #tpu.memory_space<vmem>>) attributes {dimension_semantics = [], scalar_prefetch = 0 : i64, scratch_operands = 0 : i64, tpu.core_type = #tpu.core_type<tc>} {
    %c0 = arith.constant 0 : index
    %c0_0 = arith.constant 0 : index
    %0 = vector.load %arg2[%c0, %c0_0] : memref<1x2xf32, #tpu.memory_space<vmem>>, vector<1x2xf32>
    %c0_1 = arith.constant 0 : index
    %1 = memref.load %arg0[%c0_1] : memref<32xi32, #tpu.memory_space<smem>>
    %c0_i32 = arith.constant 0 : i32
    %2 = arith.addi %1, %c0_i32 : i32
    %3 = arith.index_cast %2 : i32 to index
    %c0_2 = arith.constant 0 : index
    %4 = vector.load %arg1[%3, %c0_2] : memref<256x2xf32, #tpu.memory_space<vmem>>, vector<1x2xf32>
    %5 = arith.addf %0, %4 : vector<1x2xf32>
    %c1 = arith.constant 1 : index
    %6 = memref.load %arg0[%c1] : memref<32xi32, #tpu.memory_space<smem>>
    %c32_i32 = arith.constant 32 : i32
    %7 = arith.addi %6, %c32_i32 : i32
    %8 = arith.index_cast %7 : i32 to index
    %c0_3 = arith.constant 0 : index
    %9 = vector.load %arg1[%8, %c0_3] : memref<256x2xf32, #tpu.memory_space<vmem>>, vector<1x2xf32>
    %10 = arith.addf %5, %9 : vector<1x2xf32>
    %c2 = arith.constant 2 : index
    %11 = memref.load %arg0[%c2] : memref<32xi32, #tpu.memory_space<smem>>
    %c64_i32 = arith.constant 64 : i32
    %12 = arith.addi %11, %c64_i32 : i32
    %13 = arith.index_cast %12 : i32 to index
    %c0_4 = arith.constant 0 : index
    %14 = vector.load %arg1[%13, %c0_4] : memref<256x2xf32, #tpu.memory_space<vmem>>, vector<1x2xf32>
    %15 = arith.addf %10, %14 : vector<1x2xf32>
    %c3 = arith.constant 3 : index
    %16 = memref.load %arg0[%c3] : memref<32xi32, #tpu.memory_space<smem>>
    %c96_i32 = arith.constant 96 : i32
    %17 = arith.addi %16, %c96_i32 : i32
    %18 = arith.index_cast %17 : i32 to index
    %c0_5 = arith.constant 0 : index
    %19 = vector.load %arg1[%18, %c0_5] : memref<256x2xf32, #tpu.memory_space<vmem>>, vector<1x2xf32>
    %20 = arith.addf %15, %19 : vector<1x2xf32>
    %c4 = arith.constant 4 : index
    %21 = memref.load %arg0[%c4] : memref<32xi32, #tpu.memory_space<smem>>
    %c128_i32 = arith.constant 128 : i32
    %22 = arith.addi %21, %c128_i32 : i32
    %23 = arith.index_cast %22 : i32 to index
    %c0_6 = arith.constant 0 : index
    %24 = vector.load %arg1[%23, %c0_6] : memref<256x2xf32, #tpu.memory_space<vmem>>, vector<1x2xf32>
    %25 = arith.addf %20, %24 : vector<1x2xf32>
    %c5 = arith.constant 5 : index
    %26 = memref.load %arg0[%c5] : memref<32xi32, #tpu.memory_space<smem>>
    %c160_i32 = arith.constant 160 : i32
    %27 = arith.addi %26, %c160_i32 : i32
    %28 = arith.index_cast %27 : i32 to index
    %c0_7 = arith.constant 0 : index
    %29 = vector.load %arg1[%28, %c0_7] : memref<256x2xf32, #tpu.memory_space<vmem>>, vector<1x2xf32>
    %30 = arith.addf %25, %29 : vector<1x2xf32>
    %c6 = arith.constant 6 : index
    %31 = memref.load %arg0[%c6] : memref<32xi32, #tpu.memory_space<smem>>
    %c192_i32 = arith.constant 192 : i32
    %32 = arith.addi %31, %c192_i32 : i32
    %33 = arith.index_cast %32 : i32 to index
    %c0_8 = arith.constant 0 : index
    %34 = vector.load %arg1[%33, %c0_8] : memref<256x2xf32, #tpu.memory_space<vmem>>, vector<1x2xf32>
    %35 = arith.addf %30, %34 : vector<1x2xf32>
    %c7 = arith.constant 7 : index
    %36 = memref.load %arg0[%c7] : memref<32xi32, #tpu.memory_space<smem>>
    %c224_i32 = arith.constant 224 : i32
    %37 = arith.addi %36, %c224_i32 : i32
    %38 = arith.index_cast %37 : i32 to index
    %c0_9 = arith.constant 0 : index
    %39 = vector.load %arg1[%38, %c0_9] : memref<256x2xf32, #tpu.memory_space<vmem>>, vector<1x2xf32>
    %40 = arith.addf %35, %39 : vector<1x2xf32>
    %c0_10 = arith.constant 0 : index
    %c0_11 = arith.constant 0 : index
    %41 = vector.load %arg2[%c0_10, %c0_11] : memref<1x2xf32, #tpu.memory_space<vmem>>, vector<1x2xf32>
    %c8 = arith.constant 8 : index
    %42 = memref.load %arg0[%c8] : memref<32xi32, #tpu.memory_space<smem>>
    %c0_i32_12 = arith.constant 0 : i32
    %43 = arith.addi %42, %c0_i32_12 : i32
    %44 = arith.index_cast %43 : i32 to index
    %c0_13 = arith.constant 0 : index
    %45 = vector.load %arg1[%44, %c0_13] : memref<256x2xf32, #tpu.memory_space<vmem>>, vector<1x2xf32>
    %46 = arith.addf %41, %45 : vector<1x2xf32>
    %c9 = arith.constant 9 : index
    %47 = memref.load %arg0[%c9] : memref<32xi32, #tpu.memory_space<smem>>
    %c32_i32_14 = arith.constant 32 : i32
    %48 = arith.addi %47, %c32_i32_14 : i32
    %49 = arith.index_cast %48 : i32 to index
    %c0_15 = arith.constant 0 : index
    %50 = vector.load %arg1[%49, %c0_15] : memref<256x2xf32, #tpu.memory_space<vmem>>, vector<1x2xf32>
    %51 = arith.addf %46, %50 : vector<1x2xf32>
    %c10 = arith.constant 10 : index
    %52 = memref.load %arg0[%c10] : memref<32xi32, #tpu.memory_space<smem>>
    %c64_i32_16 = arith.constant 64 : i32
    %53 = arith.addi %52, %c64_i32_16 : i32
    %54 = arith.index_cast %53 : i32 to index
    %c0_17 = arith.constant 0 : index
    %55 = vector.load %arg1[%54, %c0_17] : memref<256x2xf32, #tpu.memory_space<vmem>>, vector<1x2xf32>
    %56 = arith.addf %51, %55 : vector<1x2xf32>
    %c11 = arith.constant 11 : index
    %57 = memref.load %arg0[%c11] : memref<32xi32, #tpu.memory_space<smem>>
    %c96_i32_18 = arith.constant 96 : i32
    %58 = arith.addi %57, %c96_i32_18 : i32
    %59 = arith.index_cast %58 : i32 to index
    %c0_19 = arith.constant 0 : index
    %60 = vector.load %arg1[%59, %c0_19] : memref<256x2xf32, #tpu.memory_space<vmem>>, vector<1x2xf32>
    %61 = arith.addf %56, %60 : vector<1x2xf32>
    %c12 = arith.constant 12 : index
    %62 = memref.load %arg0[%c12] : memref<32xi32, #tpu.memory_space<smem>>
    %c128_i32_20 = arith.constant 128 : i32
    %63 = arith.addi %62, %c128_i32_20 : i32
    %64 = arith.index_cast %63 : i32 to index
    %c0_21 = arith.constant 0 : index
    %65 = vector.load %arg1[%64, %c0_21] : memref<256x2xf32, #tpu.memory_space<vmem>>, vector<1x2xf32>
    %66 = arith.addf %61, %65 : vector<1x2xf32>
    %c13 = arith.constant 13 : index
    %67 = memref.load %arg0[%c13] : memref<32xi32, #tpu.memory_space<smem>>
    %c160_i32_22 = arith.constant 160 : i32
    %68 = arith.addi %67, %c160_i32_22 : i32
    %69 = arith.index_cast %68 : i32 to index
    %c0_23 = arith.constant 0 : index
    %70 = vector.load %arg1[%69, %c0_23] : memref<256x2xf32, #tpu.memory_space<vmem>>, vector<1x2xf32>
    %71 = arith.addf %66, %70 : vector<1x2xf32>
    %c14 = arith.constant 14 : index
    %72 = memref.load %arg0[%c14] : memref<32xi32, #tpu.memory_space<smem>>
    %c192_i32_24 = arith.constant 192 : i32
    %73 = arith.addi %72, %c192_i32_24 : i32
    %74 = arith.index_cast %73 : i32 to index
    %c0_25 = arith.constant 0 : index
    %75 = vector.load %arg1[%74, %c0_25] : memref<256x2xf32, #tpu.memory_space<vmem>>, vector<1x2xf32>
    %76 = arith.addf %71, %75 : vector<1x2xf32>
    %c15 = arith.constant 15 : index
    %77 = memref.load %arg0[%c15] : memref<32xi32, #tpu.memory_space<smem>>
    %c224_i32_26 = arith.constant 224 : i32
    %78 = arith.addi %77, %c224_i32_26 : i32
    %79 = arith.index_cast %78 : i32 to index
    %c0_27 = arith.constant 0 : index
    %80 = vector.load %arg1[%79, %c0_27] : memref<256x2xf32, #tpu.memory_space<vmem>>, vector<1x2xf32>
    %81 = arith.addf %76, %80 : vector<1x2xf32>
    %c0_28 = arith.constant 0 : index
    %c0_29 = arith.constant 0 : index
    %82 = vector.load %arg2[%c0_28, %c0_29] : memref<1x2xf32, #tpu.memory_space<vmem>>, vector<1x2xf32>
    %c16 = arith.constant 16 : index
    %83 = memref.load %arg0[%c16] : memref<32xi32, #tpu.memory_space<smem>>
    %c0_i32_30 = arith.constant 0 : i32
    %84 = arith.addi %83, %c0_i32_30 : i32
    %85 = arith.index_cast %84 : i32 to index
    %c0_31 = arith.constant 0 : index
    %86 = vector.load %arg1[%85, %c0_31] : memref<256x2xf32, #tpu.memory_space<vmem>>, vector<1x2xf32>
    %87 = arith.addf %82, %86 : vector<1x2xf32>
    %c17 = arith.constant 17 : index
    %88 = memref.load %arg0[%c17] : memref<32xi32, #tpu.memory_space<smem>>
    %c32_i32_32 = arith.constant 32 : i32
    %89 = arith.addi %88, %c32_i32_32 : i32
    %90 = arith.index_cast %89 : i32 to index
    %c0_33 = arith.constant 0 : index
    %91 = vector.load %arg1[%90, %c0_33] : memref<256x2xf32, #tpu.memory_space<vmem>>, vector<1x2xf32>
    %92 = arith.addf %87, %91 : vector<1x2xf32>
    %c18 = arith.constant 18 : index
    %93 = memref.load %arg0[%c18] : memref<32xi32, #tpu.memory_space<smem>>
    %c64_i32_34 = arith.constant 64 : i32
    %94 = arith.addi %93, %c64_i32_34 : i32
    %95 = arith.index_cast %94 : i32 to index
    %c0_35 = arith.constant 0 : index
    %96 = vector.load %arg1[%95, %c0_35] : memref<256x2xf32, #tpu.memory_space<vmem>>, vector<1x2xf32>
    %97 = arith.addf %92, %96 : vector<1x2xf32>
    %c19 = arith.constant 19 : index
    %98 = memref.load %arg0[%c19] : memref<32xi32, #tpu.memory_space<smem>>
    %c96_i32_36 = arith.constant 96 : i32
    %99 = arith.addi %98, %c96_i32_36 : i32
    %100 = arith.index_cast %99 : i32 to index
    %c0_37 = arith.constant 0 : index
    %101 = vector.load %arg1[%100, %c0_37] : memref<256x2xf32, #tpu.memory_space<vmem>>, vector<1x2xf32>
    %102 = arith.addf %97, %101 : vector<1x2xf32>
    %c20 = arith.constant 20 : index
    %103 = memref.load %arg0[%c20] : memref<32xi32, #tpu.memory_space<smem>>
    %c128_i32_38 = arith.constant 128 : i32
    %104 = arith.addi %103, %c128_i32_38 : i32
    %105 = arith.index_cast %104 : i32 to index
    %c0_39 = arith.constant 0 : index
    %106 = vector.load %arg1[%105, %c0_39] : memref<256x2xf32, #tpu.memory_space<vmem>>, vector<1x2xf32>
    %107 = arith.addf %102, %106 : vector<1x2xf32>
    %c21 = arith.constant 21 : index
    %108 = memref.load %arg0[%c21] : memref<32xi32, #tpu.memory_space<smem>>
    %c160_i32_40 = arith.constant 160 : i32
    %109 = arith.addi %108, %c160_i32_40 : i32
    %110 = arith.index_cast %109 : i32 to index
    %c0_41 = arith.constant 0 : index
    %111 = vector.load %arg1[%110, %c0_41] : memref<256x2xf32, #tpu.memory_space<vmem>>, vector<1x2xf32>
    %112 = arith.addf %107, %111 : vector<1x2xf32>
    %c22 = arith.constant 22 : index
    %113 = memref.load %arg0[%c22] : memref<32xi32, #tpu.memory_space<smem>>
    %c192_i32_42 = arith.constant 192 : i32
    %114 = arith.addi %113, %c192_i32_42 : i32
    %115 = arith.index_cast %114 : i32 to index
    %c0_43 = arith.constant 0 : index
    %116 = vector.load %arg1[%115, %c0_43] : memref<256x2xf32, #tpu.memory_space<vmem>>, vector<1x2xf32>
    %117 = arith.addf %112, %116 : vector<1x2xf32>
    %c23 = arith.constant 23 : index
    %118 = memref.load %arg0[%c23] : memref<32xi32, #tpu.memory_space<smem>>
    %c224_i32_44 = arith.constant 224 : i32
    %119 = arith.addi %118, %c224_i32_44 : i32
    %120 = arith.index_cast %119 : i32 to index
    %c0_45 = arith.constant 0 : index
    %121 = vector.load %arg1[%120, %c0_45] : memref<256x2xf32, #tpu.memory_space<vmem>>, vector<1x2xf32>
    %122 = arith.addf %117, %121 : vector<1x2xf32>
    %c0_46 = arith.constant 0 : index
    %c0_47 = arith.constant 0 : index
    %123 = vector.load %arg2[%c0_46, %c0_47] : memref<1x2xf32, #tpu.memory_space<vmem>>, vector<1x2xf32>
    %c24 = arith.constant 24 : index
    %124 = memref.load %arg0[%c24] : memref<32xi32, #tpu.memory_space<smem>>
    %c0_i32_48 = arith.constant 0 : i32
    %125 = arith.addi %124, %c0_i32_48 : i32
    %126 = arith.index_cast %125 : i32 to index
    %c0_49 = arith.constant 0 : index
    %127 = vector.load %arg1[%126, %c0_49] : memref<256x2xf32, #tpu.memory_space<vmem>>, vector<1x2xf32>
    %128 = arith.addf %123, %127 : vector<1x2xf32>
    %c25 = arith.constant 25 : index
    %129 = memref.load %arg0[%c25] : memref<32xi32, #tpu.memory_space<smem>>
    %c32_i32_50 = arith.constant 32 : i32
    %130 = arith.addi %129, %c32_i32_50 : i32
    %131 = arith.index_cast %130 : i32 to index
    %c0_51 = arith.constant 0 : index
    %132 = vector.load %arg1[%131, %c0_51] : memref<256x2xf32, #tpu.memory_space<vmem>>, vector<1x2xf32>
    %133 = arith.addf %128, %132 : vector<1x2xf32>
    %c26 = arith.constant 26 : index
    %134 = memref.load %arg0[%c26] : memref<32xi32, #tpu.memory_space<smem>>
    %c64_i32_52 = arith.constant 64 : i32
    %135 = arith.addi %134, %c64_i32_52 : i32
    %136 = arith.index_cast %135 : i32 to index
    %c0_53 = arith.constant 0 : index
    %137 = vector.load %arg1[%136, %c0_53] : memref<256x2xf32, #tpu.memory_space<vmem>>, vector<1x2xf32>
    %138 = arith.addf %133, %137 : vector<1x2xf32>
    %c27 = arith.constant 27 : index
    %139 = memref.load %arg0[%c27] : memref<32xi32, #tpu.memory_space<smem>>
    %c96_i32_54 = arith.constant 96 : i32
    %140 = arith.addi %139, %c96_i32_54 : i32
    %141 = arith.index_cast %140 : i32 to index
    %c0_55 = arith.constant 0 : index
    %142 = vector.load %arg1[%141, %c0_55] : memref<256x2xf32, #tpu.memory_space<vmem>>, vector<1x2xf32>
    %143 = arith.addf %138, %142 : vector<1x2xf32>
    %c28 = arith.constant 28 : index
    %144 = memref.load %arg0[%c28] : memref<32xi32, #tpu.memory_space<smem>>
    %c128_i32_56 = arith.constant 128 : i32
    %145 = arith.addi %144, %c128_i32_56 : i32
    %146 = arith.index_cast %145 : i32 to index
    %c0_57 = arith.constant 0 : index
    %147 = vector.load %arg1[%146, %c0_57] : memref<256x2xf32, #tpu.memory_space<vmem>>, vector<1x2xf32>
    %148 = arith.addf %143, %147 : vector<1x2xf32>
    %c29 = arith.constant 29 : index
    %149 = memref.load %arg0[%c29] : memref<32xi32, #tpu.memory_space<smem>>
    %c160_i32_58 = arith.constant 160 : i32
    %150 = arith.addi %149, %c160_i32_58 : i32
    %151 = arith.index_cast %150 : i32 to index
    %c0_59 = arith.constant 0 : index
    %152 = vector.load %arg1[%151, %c0_59] : memref<256x2xf32, #tpu.memory_space<vmem>>, vector<1x2xf32>
    %153 = arith.addf %148, %152 : vector<1x2xf32>
    %c30 = arith.constant 30 : index
    %154 = memref.load %arg0[%c30] : memref<32xi32, #tpu.memory_space<smem>>
    %c192_i32_60 = arith.constant 192 : i32
    %155 = arith.addi %154, %c192_i32_60 : i32
    %156 = arith.index_cast %155 : i32 to index
    %c0_61 = arith.constant 0 : index
    %157 = vector.load %arg1[%156, %c0_61] : memref<256x2xf32, #tpu.memory_space<vmem>>, vector<1x2xf32>
    %158 = arith.addf %153, %157 : vector<1x2xf32>
    %c31 = arith.constant 31 : index
    %159 = memref.load %arg0[%c31] : memref<32xi32, #tpu.memory_space<smem>>
    %c224_i32_62 = arith.constant 224 : i32
    %160 = arith.addi %159, %c224_i32_62 : i32
    %161 = arith.index_cast %160 : i32 to index
    %c0_63 = arith.constant 0 : index
    %162 = vector.load %arg1[%161, %c0_63] : memref<256x2xf32, #tpu.memory_space<vmem>>, vector<1x2xf32>
    %163 = arith.addf %158, %162 : vector<1x2xf32>
    %164 = tpu.concatenate %40, %81, %122, %163 in 0 : vector<1x2xf32>, vector<1x2xf32>, vector<1x2xf32>, vector<1x2xf32> -> vector<4x2xf32>
    %cst = arith.constant dense<0xFF800000> : vector<4xf32>
    %165 = vector.multi_reduction <maximumf>, %164, %cst [1] : vector<4x2xf32> to vector<4xf32>
    %166 = vector.shape_cast %165 : vector<4xf32> to vector<4x1xf32>
    %167 = vector.broadcast %166 : vector<4x1xf32> to vector<4x2xf32>
    %168 = arith.subf %164, %167 : vector<4x2xf32>
    %169 = math.exp %168 : vector<4x2xf32>
    %cst_64 = arith.constant dense<0.000000e+00> : vector<4xf32>
    %170 = vector.multi_reduction <add>, %169, %cst_64 [1] : vector<4x2xf32> to vector<4xf32>
    %171 = vector.shape_cast %170 : vector<4xf32> to vector<4x1xf32>
    %172 = math.log %171 : vector<4x1xf32>
    %173 = vector.broadcast %172 : vector<4x1xf32> to vector<4x2xf32>
    %174 = arith.subf %168, %173 : vector<4x2xf32>
    %c0_65 = arith.constant 0 : index
    %c0_66 = arith.constant 0 : index
    %175 = vector.load %arg3[%c0_65, %c0_66] : memref<4x2xf32, #tpu.memory_space<vmem>>, vector<4x2xf32>
    tpu.vector_store %arg3[%c0_65, %c0_66], %174 {strides = array<i32>} : memref<4x2xf32, #tpu.memory_space<vmem>>, vector<4x2xf32>,
    return
  }
}

</mosaic_0001>

<bundles_post_ra>
// kernel: imdb_forward.1
= control target key start
LH: loop header
LB: loop body
LE: loop exit
PB: predicated region body
PF: predicated region fallthrough
CT: control target
= control target key end

     0   :  { %8 = vsyncpa [#allocation3], 0  ;;  %s356_s15 = smov [#allocation2]   ;;  %s579_s0 = inlined_call_operand.vmem [shape: s32[32], index: 0, kind: input, shape index: {}]   ;;  %s580_s1 = inlined_call_operand.vmem [shape: f32[256,2], index: 1, kind: input, shape index: {}]   ;;  %s581_s2 = inlined_call_operand.vmem [shape: f32[1,2], index: 2, kind: input, shape index: {}]   ;;  %s582_s3 = inlined_call_operand.vmem [shape: f32[4,2], index: 3, kind: output, shape index: {}]  }
   0x1   :  { %s14_s14 = sshll.u32 %s579_s0, 4  ;;  %s15_s14 = int_to_ptr.vmem [resolvable:$true] %s14_s14 }
   0x2   :  { %17 = dma.vmem_to_smem %s15_s14, 16, %s356_s15, [#allocation3]  }
   0x3   :  { %354 = dma.done.wait [#allocation3], 16  }
   0x4   :  { %355 = vsyncadd [#allocation3], 4294967280 }
   0x5   :  { %26 = sfence }
   0x6   :  { %s28_s16 = sld [smem:[#allocation2]]  ;;  %v405_v1 = vld [vmem:[%s581_s2] sm:$0x1]  ;;  %vm193_vm0 = vcmask 1040384   ;;  %vm195_vm1 = vcmask 1041408   ;;  %vm197_vm2 = vcmask 1042432  }
   0x7   :  { %s278_s17 = sld [smem:[#allocation2 + $0x1]]  ;;  %vm199_vm3 = vcmask 11264  }
   0x8   :  { %s380_s18 = sld [smem:[#allocation2 + $0x2]] }
   0x9   :  { %s382_s19 = sld [smem:[#allocation2 + $0x3]] }
   0xa   :  { %s384_s20 = sld [smem:[#allocation2 + $0x4]] }
   0xb   :  { %s386_s21 = sld [smem:[#allocation2 + $0x5]] }
   0xc   :  { %s29_s23 = scalar_lea.vmem %s580_s1, %s28_s16  ;;  %s391_s24 = sld [smem:[#allocation2 + $0x6]] }
   0xd   :  { %s393_s25 = sld [smem:[#allocation2 + $0x7]]  ;;  %v30_v0 = vld [vmem:[%s29_s23] sm:$0x1]  ;;  %s219_s29 = scalar_lea.vmem %s580_s1, %s278_s17 }
   0xe   :  { %s292_s26 = sld [smem:[#allocation2 + $0x8]]  ;;  %s221_s6 = scalar_lea.vmem %s580_s1, %s380_s18  ;;  %v31_v2 = vadd.f32 %v30_v0, %v405_v1  ;;  %v279_v3 = vld [vmem:[%s219_s29 + $0x20] sm:$0x1] }
   0xf   :  { %s293_s30 = sld [smem:[#allocation2 + $0x9]]  ;;  %s223_s12 = scalar_lea.vmem %s580_s1, %s382_s19  ;;  %v281_v8 = vld [vmem:[%s221_s6 + $0x40] sm:$0x1] }
  0x10   :  { %s295_s7 = sld [smem:[#allocation2 + $0xa]]  ;;  %s225_s16 = scalar_lea.vmem %s580_s1, %s384_s20  ;;  %v36_v5 = vadd.f32 %v279_v3, %v31_v2  ;;  %v283_v14 = vld [vmem:[%s223_s12 + $0x60] sm:$0x1] }
  0x11   :  { %s297_s13 = sld [smem:[#allocation2 + $0xb]]  ;;  %s227_s22 = scalar_lea.vmem %s580_s1, %s386_s21  ;;  %v285_v19 = vld [vmem:[%s225_s16 + $0x80] sm:$0x1] }
  0x12   :  { %s416_s17 = sld [smem:[#allocation2 + $0xc]]  ;;  %v41_v12 = vadd.f32 %v281_v8, %v36_v5  ;;  %v287_v28 = vld [vmem:[%s227_s22 + $0xa0] sm:$0x1] }
  0x13   :  { %s422_s2 = sld [smem:[#allocation2 + $0xd]]  ;;  %s231_s11 = scalar_lea.vmem %s580_s1, %s393_s25 }
  0x14   :  { %s68_s28 = scalar_lea.vmem %s580_s1, %s292_s26  ;;  %s427_s4 = sld [smem:[#allocation2 + $0xe]]  ;;  %v46_v18 = vadd.f32 %v283_v14, %v41_v12  ;;  %v291_v53 = vld [vmem:[%s231_s11 + $0xe0] sm:$0x1] }
  0x15   :  { %v69_v4 = vld [vmem:[%s68_s28] sm:$0x1]  ;;  %s234_s9 = scalar_lea.vmem %s580_s1, %s293_s30  ;;  %s432_s29 = sld [smem:[#allocation2 + $0xf]] }
  0x16   :  { %v70_v6 = vadd.f32 %v69_v4, %v405_v1  ;;  %v294_v7 = vld [vmem:[%s234_s9 + $0x20] sm:$0x1]  ;;  %s236_s14 = scalar_lea.vmem %s580_s1, %s295_s7  ;;  %s307_s26 = sld [smem:[#allocation2 + $0x10]]  ;;  %v51_v27 = vadd.f32 %v285_v19, %v46_v18 }
  0x17   :  { %v296_v9 = vld [vmem:[%s236_s14 + $0x40] sm:$0x1]  ;;  %s238_s30 = scalar_lea.vmem %s580_s1, %s297_s13  ;;  %s308_s0 = sld [smem:[#allocation2 + $0x11]] }
  0x18   :  { %v75_v10 = vadd.f32 %v294_v7, %v70_v6  ;;  %s240_s28 = scalar_lea.vmem %s580_s1, %s416_s17  ;;  %s310_s5 = sld [smem:[#allocation2 + $0x12]]  ;;  %v298_v11 = vld [vmem:[%s238_s30 + $0x60] sm:$0x1]  ;;  %v56_v36 = vadd.f32 %v287_v28, %v51_v27 }
  0x19   :  { %s229_s7 = scalar_lea.vmem %s580_s1, %s391_s24  ;;  %s449_s10 = sld [smem:[#allocation2 + $0x13]]  ;;  %v300_v15 = vld [vmem:[%s240_s28 + $0x80] sm:$0x1] }
  0x1a   :  { %v80_v13 = vadd.f32 %v296_v9, %v75_v10  ;;  %s242_s13 = scalar_lea.vmem %s580_s1, %s422_s2  ;;  %s455_s14 = sld [smem:[#allocation2 + $0x14]]  ;;  %v289_v37 = vld [vmem:[%s229_s7 + $0xc0] sm:$0x1] }
  0x1b   :  { %s244_s30 = scalar_lea.vmem %s580_s1, %s427_s4  ;;  %s466_s27 = sld [smem:[#allocation2 + $0x15]]  ;;  %v302_v23 = vld [vmem:[%s242_s13 + $0xa0] sm:$0x1]  ;;  %v61_v48 = vadd.f32 %v289_v37, %v56_v36 }
  0x1c   :  { %v85_v16 = vadd.f32 %v298_v11, %v80_v13  ;;  %s107_s2 = scalar_lea.vmem %s580_s1, %s307_s26  ;;  %s471_s6 = sld [smem:[#allocation2 + $0x16]]  ;;  %v304_v31 = vld [vmem:[%s244_s30 + $0xc0] sm:$0x1] }
  0x1d   :  { %v108_v17 = vld [vmem:[%s107_s2] sm:$0x1]  ;;  %s249_s12 = scalar_lea.vmem %s580_s1, %s308_s0  ;;  %s476_s28 = sld [smem:[#allocation2 + $0x17]]  ;;  %v66_v58 = vadd.f32 %v291_v53, %v61_v48 }
  0x1e   :  { %v90_v20 = vadd.f32 %v300_v15, %v85_v16  ;;  %v109_v21 = vadd.f32 %v108_v17, %v405_v1  ;;  %v309_v22 = vld [vmem:[%s249_s12 + $0x20] sm:$0x1]  ;;  %s251_s23 = scalar_lea.vmem %s580_s1, %s310_s5  ;;  %s322_s0 = sld [smem:[#allocation2 + $0x18]] }
  0x1f   :  { %v311_v24 = vld [vmem:[%s251_s23 + $0x40] sm:$0x1]  ;;  %s253_s2 = scalar_lea.vmem %s580_s1, %s449_s10  ;;  %s323_s20 = sld [smem:[#allocation2 + $0x19]] }
  0x20   :  { %v114_v25 = vadd.f32 %v309_v22, %v109_v21  ;;  %s255_s19 = scalar_lea.vmem %s580_s1, %s455_s14  ;;  %s495_s12 = sld [smem:[#allocation2 + $0x1a]]  ;;  %v313_v26 = vld [vmem:[%s253_s2 + $0x60] sm:$0x1]  ;;  %v95_v29 = vadd.f32 %v302_v23, %v90_v20 }
  0x21   :  { %s246_s18 = scalar_lea.vmem %s580_s1, %s432_s29  ;;  %s501_s13 = sld [smem:[#allocation2 + $0x1b]]  ;;  %v315_v32 = vld [vmem:[%s255_s19 + $0x80] sm:$0x1] }
  0x22   :  { %v119_v30 = vadd.f32 %v311_v24, %v114_v25  ;;  %s257_s23 = scalar_lea.vmem %s580_s1, %s466_s27  ;;  %s512_s8 = sld [smem:[#allocation2 + $0x1c]]  ;;  %v100_v38 = vadd.f32 %v304_v31, %v95_v29  ;;  %v306_v42 = vld [vmem:[%s246_s18 + $0xe0] sm:$0x1] }
  0x23   :  { %s259_s21 = scalar_lea.vmem %s580_s1, %s471_s6  ;;  %s523_s22 = sld [smem:[#allocation2 + $0x1d]]  ;;  %v317_v34 = vld [vmem:[%s257_s23 + $0xa0] sm:$0x1] }
  0x24   :  { %v124_v33 = vadd.f32 %v313_v26, %v119_v30  ;;  %s146_s27 = scalar_lea.vmem %s580_s1, %s322_s0  ;;  %s528_s5 = sld [smem:[#allocation2 + $0x1e]]  ;;  %v319_v43 = vld [vmem:[%s259_s21 + $0xc0] sm:$0x1]  ;;  %v105_v49 = vadd.f32 %v306_v42, %v100_v38 }
  0x25   :  { %v147_v35 = vld [vmem:[%s146_s27] sm:$0x1]  ;;  %s264_s19 = scalar_lea.vmem %s580_s1, %s323_s20  ;;  %s543_s14 = sld [smem:[#allocation2 + $0x1f]] }
  0x26   :  { %v129_v39 = vadd.f32 %v315_v32, %v124_v33  ;;  %v148_v40 = vadd.f32 %v147_v35, %v405_v1  ;;  %v324_v41 = vld [vmem:[%s264_s19 + $0x20] sm:$0x1]  ;;  %s266_s10 = scalar_lea.vmem %s580_s1, %s495_s12  ;;  %s261_s24 = scalar_lea.vmem %s580_s1, %s476_s28  ;;  %v185_v60 = vperm.slane %v105_v49, 0 }
  0x27   :  { %v326_v44 = vld [vmem:[%s266_s10 + $0x40] sm:$0x1]  ;;  %s268_s29 = scalar_lea.vmem %s580_s1, %s501_s13 }
  0x28   :  { %v134_v45 = vadd.f32 %v317_v34, %v129_v39  ;;  %v153_v46 = vadd.f32 %v324_v41, %v148_v40  ;;  %s270_s18 = scalar_lea.vmem %s580_s1, %s512_s8  ;;  %v328_v47 = vld [vmem:[%s268_s29 + $0x60] sm:$0x1]  ;;  %v194_v2 = vsel %vm193_vm0, %v66_v58, %v185_v60 }
  0x29   :  { %v321_v51 = vld [vmem:[%s261_s24 + $0xe0] sm:$0x1]  ;;  %s272_s13 = scalar_lea.vmem %s580_s1, %s523_s22 }
  0x2a   :  { %v139_v50 = vadd.f32 %v319_v43, %v134_v45  ;;  %v158_v52 = vadd.f32 %v326_v44, %v153_v46  ;;  %v330_v54 = vld [vmem:[%s270_s18 + $0x80] sm:$0x1]  ;;  %s274_s4 = scalar_lea.vmem %s580_s1, %s528_s5 }
  0x2b   :  { %v332_v57 = vld [vmem:[%s272_s13 + $0xa0] sm:$0x1]  ;;  %s276_s19 = scalar_lea.vmem %s580_s1, %s543_s14 }
  0x2c   :  { %v163_v55 = vadd.f32 %v328_v47, %v158_v52  ;;  %v144_v56 = vadd.f32 %v321_v51, %v139_v50  ;;  %v334_v61 = vld [vmem:[%s274_s4 + $0xc0] sm:$0x1] }
  0x2d   :  { %v336_v63 = vld [vmem:[%s276_s19 + $0xe0] sm:$0x1] }
  0x2e   :  { %v168_v59 = vadd.f32 %v330_v54, %v163_v55  ;;  %v188_v0 = vperm.slane %v144_v56, 0 }
  0x30   :  { %v173_v62 = vadd.f32 %v332_v57, %v168_v59  ;;  %v196_v4 = vsel %vm195_vm1, %v194_v2, %v188_v0 }
  0x32   :  { %v178_v1 = vadd.f32 %v334_v61, %v173_v62 }
  0x34   :  { %v183_v3 = vadd.f32 %v336_v63, %v178_v1 }
  0x36   :  { %v191_v5 = vperm.slane %v183_v3, 0 }
  0x38   :  { %v198_v6 = vsel %vm197_vm2, %v196_v4, %v191_v5 }
  0x39   :  { %v200_v7 = vsel %vm199_vm3, %v198_v6, -inf }
  0x3a   :  { %201 = vmax.xlane.f32.xlu0 %v200_v7 }
  0xad   :  { %v202_v8 = vpop.xlane.xlu0 %201 }
  0xae   :  { %v203_v9 = vsub.f32 %v198_v6, %v202_v8 }
  0xb0   :  { %v204_v10 = vmul.f32 1.442695, %v203_v9 }
  0xb2   :  { %338 = vpow2.f32 %v204_v10 }
  0xb8   :  { %v339_v11 = vpop.eup %338 }
  0xb9   :  { %v206_v12 = vsel %vm199_vm3, %v339_v11, 0.0 }
  0xba   :  { %207 = vadd.xlane.f32.xlu0 %v206_v12 }
 0x12d   :  { %v208_v13 = vpop.xlane.xlu0 %207 }
 0x12e   :  { %340 = vlog2.f32 %v208_v13 }
 0x134   :  { %v341_v14 = vpop.eup %340 }
 0x135   :  { %v210_v15 = vmul.f32 0.6931472, %v341_v14 }
 0x137   :  { %v211_v16 = vsub.f32 %v203_v9, %v210_v15 }
 0x139   :  { %212 = vst.msk [vmem:[%s582_s3] sm:$0xf] %vm199_vm3, %v211_v16 }
 0x13a   :  { %217 = vsyncpa [#allocation3], 1 }

</bundles_post_ra>
